<compile_context>
chip_gen: v5e
topology: v5e:2x2
jax: 0.10.0
libtpu: 0.0.40
codegen_flags: <defaults>
</compile_context>

<pallas_src>
import functools

import jax
import jax.numpy as jnp
from jax.experimental import pallas as pl
from jax.experimental.pallas import tpu as pltpu

LANES = 128


def _device_config():
    """Return (max_tile_rows, core_splits) tuned per TPU generation."""
    try:
        kind = jax.devices()[0].device_kind.lower()
    except Exception:
        kind = ""
    if "v7" in kind:                       # 2 TensorCores per chip
        return 2048, 2                     # (4096 also fits; sweep if needed)
    if "v6" in kind:                       # single TC, 128 MiB VMEM
        return 2048, 1
    if "v5" in kind:
        if "lite" in kind or "v5e" in kind:
            return 2048, 1                 # v5e: single TC
        return 2048, 2                     # v5p: megacore (2 TCs)
    if "v4" in kind:
        return 2048, 2                     # v4: megacore (2 TCs)
    return 1024, 1                         # conservative default


def _min_tile_rows(dtypes):
    """Sublane-packing floor: 8 rows for 4-byte, 16 for 2-byte, 32 for 1-byte."""
    m = 8
    for dt in dtypes:
        itemsize = jnp.dtype(dt).itemsize
        m = max(m, 8 * max(1, 4 // itemsize))
    return m


def _choose_tile_rows(rows_target, min_rows, max_rows):
    """Largest power-of-two tile <= max_rows, >= min_rows, not grossly
    oversized for rows_target (limits wasted VMEM for small inputs)."""
    t = max_rows
    while t > min_rows and (t // 2) >= rows_target:
        t //= 2
    return max(t, min_rows)


def _loss_kernel(p1_ref, p2_ref, zs_ref, p1t_ref, p2t_ref, out_ref, *,
                 rows, tile_rows, steps_per_split, needs_mask):
    i = pl.program_id(1)                         # reduction axis (innermost)

    @pl.when(i == 0)
    def _():
        out_ref[...] = jnp.zeros_like(out_ref)   # (8, 128) resident accumulator

    # Stream in native dtype; upcast to f32 only in-register.
    d1 = p1_ref[...].astype(jnp.float32) - p1t_ref[...].astype(jnp.float32)
    d2 = p2_ref[...].astype(jnp.float32) - p2t_ref[...].astype(jnp.float32)
    zs = zs_ref[...].astype(jnp.float32)
    part = d1 * d1 + d2 * d2 + zs * zs           # (tile_rows, 128) f32

    if needs_mask:
        # Zero rows beyond the true row count (partial last block and fully
        # clamped duplicate steps).  Mask is applied before accumulation so
        # stale VMEM beyond the partial DMA cannot contribute.
        s = pl.program_id(0) * steps_per_split + i        # logical step
        row0 = s * tile_rows
        local = jax.lax.broadcasted_iota(jnp.int32, (tile_rows, LANES), 0)
        part = jnp.where(row0 + local < rows, part, 0.0)

    # Tree-reduce this tile into the fixed (8, 128) output accumulator.
    out_ref[...] += jnp.sum(part.reshape(tile_rows // 8, 8, LANES), axis=0)


def custom_loss(p1_values, p2_values, zero_sums, p1_targets, p2_targets):
    """Pallas equivalent of CustomLossFunction.forward."""
    inputs = (p1_values, p2_values, zero_sums, p1_targets, p2_targets)
    n_total = p1_values.size
    flats = [a.reshape(-1) for a in inputs]      # contiguous reshape: no copy

    main = (n_total // LANES) * LANES            # lane-aligned prefix
    tail = n_total - main                        # < 128 leftover elements

    total_sum = jnp.float32(0.0)

    if main:
        rows = main // LANES
        max_tile, splits = _device_config()
        min_rows = _min_tile_rows([a.dtype for a in inputs])
        rows_per_split = pl.cdiv(rows, splits)
        tile_rows = _choose_tile_rows(rows_per_split, min_rows, max_tile)
        steps_per_split = pl.cdiv(rows_per_split, tile_rows)
        steps_total = pl.cdiv(rows, tile_rows)
        needs_mask = (splits * steps_per_split * tile_rows) != rows

        def in_map(c, i):
            # Clamp trailing duplicate steps onto the last real block; they
            # are fully masked in-kernel and their re-fetch is elided because
            # the block index does not change.
            return (jnp.minimum(c * steps_per_split + i, steps_total - 1), 0)

        tile_spec = pl.BlockSpec((tile_rows, LANES), in_map)

        slabs = [(f if main == n_total else f[:main]).reshape(rows, LANES)
                 for f in flats]

        partials = pl.pallas_call(
            functools.partial(_loss_kernel,
                              rows=rows,
                              tile_rows=tile_rows,
                              steps_per_split=steps_per_split,
                              needs_mask=needs_mask),
            out_shape=jax.ShapeDtypeStruct((splits, 8, LANES), jnp.float32),
            grid_spec=pltpu.PrefetchScalarGridSpec(
                num_scalar_prefetch=0,
                grid=(splits, steps_per_split),
                in_specs=[tile_spec] * 5,
                # Lane-dense (8,128) accumulator output per core split.
                out_specs=pl.BlockSpec((None, 8, LANES),
                                       lambda c, i: (c, 0, 0)),
            ),
            compiler_params=pltpu.CompilerParams(
                dimension_semantics=("parallel", "arbitrary"),
                vmem_limit_bytes=32 * 1024 * 1024,
            ),
        )(*slabs)

        total_sum = total_sum + jnp.sum(partials)

    if tail:
        # Tiny (<128 element) remainder handled in plain jnp — avoids padding
        # (and re-copying) the full arrays just to round up to a lane multiple.
        t = [f[main:].astype(jnp.float32) for f in flats]
        total_sum = total_sum + jnp.sum((t[0] - t[3]) ** 2
                                        + (t[1] - t[4]) ** 2
                                        + t[2] ** 2)

    return total_sum * jnp.float32(1.0 / n_total)


if __name__ == "__main__":
    key = jax.random.PRNGKey(0)
    k1, k2, k3, k4, k5 = jax.random.split(key, 5)

    # Small NCHW-shaped value tensors: batch=2, channels=4, spatial=16x16.
    shape = (2, 4, 16, 16)
    p1_values = jax.random.normal(k1, shape, dtype=jnp.float32)
    p2_values = jax.random.normal(k2, shape, dtype=jnp.float32)
    zero_sums = jax.random.normal(k3, shape, dtype=jnp.float32)
    p1_targets = jax.random.normal(k4, shape, dtype=jnp.float32)
    p2_targets = jax.random.normal(k5, shape, dtype=jnp.float32)

    loss = custom_loss(p1_values, p2_values, zero_sums, p1_targets, p2_targets)
    loss = jax.block_until_ready(loss)

    # Reference check in plain JAX.
    ref = jnp.mean((p1_values - p1_targets) ** 2
                   + (p2_values - p2_targets) ** 2
                   + zero_sums ** 2)
    assert jnp.allclose(loss, ref, rtol=1e-5, atol=1e-5), (loss, ref)

    print("KERNEL_OK")
</pallas_src>

<mosaic_0001>
module attributes {stable_mosaic.version = 11 : i64} {
  func.func @_loss_kernel(%arg0: i32, %arg1: i32, %arg2: memref<16x128xf32, #tpu.memory_space<vmem>>, %arg3: memref<16x128xf32, #tpu.memory_space<vmem>>, %arg4: memref<16x128xf32, #tpu.memory_space<vmem>>, %arg5: memref<16x128xf32, #tpu.memory_space<vmem>>, %arg6: memref<16x128xf32, #tpu.memory_space<vmem>>, %arg7: memref<1x8x128xf32, #tpu.memory_space<vmem>>) attributes {dimension_semantics = [#tpu.dimension_semantics<parallel>, #tpu.dimension_semantics<arbitrary>], iteration_bounds = array<i64: 1, 1>, scalar_prefetch = 0 : i64, scratch_operands = 0 : i64, tpu.core_type = #tpu.core_type<tc>, window_params = [{transform_indices = @transform_0, window_bounds = array<i64: 16, 128>}, {transform_indices = @transform_1, window_bounds = array<i64: 16, 128>}, {transform_indices = @transform_2, window_bounds = array<i64: 16, 128>}, {transform_indices = @transform_3, window_bounds = array<i64: 16, 128>}, {transform_indices = @transform_4, window_bounds = array<i64: 16, 128>}, {transform_indices = @transform_5, window_bounds = array<i64: 1, 8, 128>}]} {
    %c0_i32 = arith.constant 0 : i32
    %0 = arith.cmpi eq, %arg1, %c0_i32 : i32
    %1 = arith.extui %0 : i1 to i32
    %c0_i32_0 = arith.constant 0 : i32
    %2 = arith.cmpi ne, %1, %c0_i32_0 : i32
    scf.if %2 {
      %cst_16 = arith.constant 0.000000e+00 : f32
      %23 = vector.broadcast %cst_16 : f32 to vector<8x128xf32>
      %c0_17 = arith.constant 0 : index
      %c0_18 = arith.constant 0 : index
      %c0_19 = arith.constant 0 : index
      %24 = vector.load %arg7[%c0_17, %c0_18, %c0_19] : memref<1x8x128xf32, #tpu.memory_space<vmem>>, vector<1x8x128xf32>
      %25 = vector.shape_cast %24 : vector<1x8x128xf32> to vector<8x128xf32>
      %26 = vector.shape_cast %23 : vector<8x128xf32> to vector<1x8x128xf32>
      tpu.vector_store %arg7[%c0_17, %c0_18, %c0_19], %26 {strides = array<i32>} : memref<1x8x128xf32, #tpu.memory_space<vmem>>, vector<1x8x128xf32>,
    } else {
    }
    %c0 = arith.constant 0 : index
    %c0_1 = arith.constant 0 : index
    %3 = vector.load %arg2[%c0, %c0_1] : memref<16x128xf32, #tpu.memory_space<vmem>>, vector<16x128xf32>
    %c0_2 = arith.constant 0 : index
    %c0_3 = arith.constant 0 : index
    %4 = vector.load %arg5[%c0_2, %c0_3] : memref<16x128xf32, #tpu.memory_space<vmem>>, vector<16x128xf32>
    %5 = arith.subf %3, %4 : vector<16x128xf32>
    %c0_4 = arith.constant 0 : index
    %c0_5 = arith.constant 0 : index
    %6 = vector.load %arg3[%c0_4, %c0_5] : memref<16x128xf32, #tpu.memory_space<vmem>>, vector<16x128xf32>
    %c0_6 = arith.constant 0 : index
    %c0_7 = arith.constant 0 : index
    %7 = vector.load %arg6[%c0_6, %c0_7] : memref<16x128xf32, #tpu.memory_space<vmem>>, vector<16x128xf32>
    %8 = arith.subf %6, %7 : vector<16x128xf32>
    %c0_8 = arith.constant 0 : index
    %c0_9 = arith.constant 0 : index
    %9 = vector.load %arg4[%c0_8, %c0_9] : memref<16x128xf32, #tpu.memory_space<vmem>>, vector<16x128xf32>
    %10 = arith.mulf %5, %5 : vector<16x128xf32>
    %11 = arith.mulf %8, %8 : vector<16x128xf32>
    %12 = arith.addf %10, %11 : vector<16x128xf32>
    %13 = arith.mulf %9, %9 : vector<16x128xf32>
    %14 = arith.addf %12, %13 : vector<16x128xf32>
    %c0_10 = arith.constant 0 : index
    %c0_11 = arith.constant 0 : index
    %c0_12 = arith.constant 0 : index
    %15 = vector.load %arg7[%c0_10, %c0_11, %c0_12] : memref<1x8x128xf32, #tpu.memory_space<vmem>>, vector<1x8x128xf32>
    %16 = vector.shape_cast %15 : vector<1x8x128xf32> to vector<8x128xf32>
    %17 = vector.shape_cast %14 : vector<16x128xf32> to vector<2x8x128xf32>
    %cst = arith.constant dense<0.000000e+00> : vector<8x128xf32>
    %18 = vector.multi_reduction <add>, %17, %cst [0] : vector<2x8x128xf32> to vector<8x128xf32>
    %19 = arith.addf %16, %18 : vector<8x128xf32>
    %c0_13 = arith.constant 0 : index
    %c0_14 = arith.constant 0 : index
    %c0_15 = arith.constant 0 : index
    %20 = vector.load %arg7[%c0_13, %c0_14, %c0_15] : memref<1x8x128xf32, #tpu.memory_space<vmem>>, vector<1x8x128xf32>
    %21 = vector.shape_cast %20 : vector<1x8x128xf32> to vector<8x128xf32>
    %22 = vector.shape_cast %19 : vector<8x128xf32> to vector<1x8x128xf32>
    tpu.vector_store %arg7[%c0_13, %c0_14, %c0_15], %22 {strides = array<i32>} : memref<1x8x128xf32, #tpu.memory_space<vmem>>, vector<1x8x128xf32>,
    return
  }
  func.func @transform_0(%arg0: i32, %arg1: i32) -> (i32, i32) {
    %c1_i32 = arith.constant 1 : i32
    %0 = arith.muli %arg0, %c1_i32 : i32
    %1 = arith.addi %0, %arg1 : i32
    %c0_i32 = arith.constant 0 : i32
    %2 = arith.minsi %1, %c0_i32 : i32
    %c0_i32_0 = arith.constant 0 : i32
    %c0_i32_1 = arith.constant 0 : i32
    return %2, %c0_i32_0 : i32, i32
  }
  func.func @transform_1(%arg0: i32, %arg1: i32) -> (i32, i32) {
    %c1_i32 = arith.constant 1 : i32
    %0 = arith.muli %arg0, %c1_i32 : i32
    %1 = arith.addi %0, %arg1 : i32
    %c0_i32 = arith.constant 0 : i32
    %2 = arith.minsi %1, %c0_i32 : i32
    %c0_i32_0 = arith.constant 0 : i32
    %c0_i32_1 = arith.constant 0 : i32
    return %2, %c0_i32_0 : i32, i32
  }
  func.func @transform_2(%arg0: i32, %arg1: i32) -> (i32, i32) {
    %c1_i32 = arith.constant 1 : i32
    %0 = arith.muli %arg0, %c1_i32 : i32
    %1 = arith.addi %0, %arg1 : i32
    %c0_i32 = arith.constant 0 : i32
    %2 = arith.minsi %1, %c0_i32 : i32
    %c0_i32_0 = arith.constant 0 : i32
    %c0_i32_1 = arith.constant 0 : i32
    return %2, %c0_i32_0 : i32, i32
  }
  func.func @transform_3(%arg0: i32, %arg1: i32) -> (i32, i32) {
    %c1_i32 = arith.constant 1 : i32
    %0 = arith.muli %arg0, %c1_i32 : i32
    %1 = arith.addi %0, %arg1 : i32
    %c0_i32 = arith.constant 0 : i32
    %2 = arith.minsi %1, %c0_i32 : i32
    %c0_i32_0 = arith.constant 0 : i32
    %c0_i32_1 = arith.constant 0 : i32
    return %2, %c0_i32_0 : i32, i32
  }
  func.func @transform_4(%arg0: i32, %arg1: i32) -> (i32, i32) {
    %c1_i32 = arith.constant 1 : i32
    %0 = arith.muli %arg0, %c1_i32 : i32
    %1 = arith.addi %0, %arg1 : i32
    %c0_i32 = arith.constant 0 : i32
    %2 = arith.minsi %1, %c0_i32 : i32
    %c0_i32_0 = arith.constant 0 : i32
    %c0_i32_1 = arith.constant 0 : i32
    return %2, %c0_i32_0 : i32, i32
  }
  func.func @transform_5(%arg0: i32, %arg1: i32) -> (i32, i32, i32) {
    %c0_i32 = arith.constant 0 : i32
    %c0_i32_0 = arith.constant 0 : i32
    %c0_i32_1 = arith.constant 0 : i32
    return %arg0, %c0_i32, %c0_i32_0 : i32, i32, i32
  }
}

</mosaic_0001>

<bundles_post_ra>
// kernel: tpu_custom_call.1
= control target key start
LH: loop header
LB: loop body
LE: loop exit
PB: predicated region body
PF: predicated region fallthrough
CT: control target
= control target key end

     0   :  { %10 = vsyncpa [#allocation3], 0  ;;  %s428_s0 = inlined_call_operand.hbm [shape: f32[16,128], index: 0, kind: input, shape index: {}]   ;;  %s429_s1 = inlined_call_operand.hbm [shape: f32[16,128], index: 1, kind: input, shape index: {}]   ;;  %s430_s2 = inlined_call_operand.hbm [shape: f32[16,128], index: 2, kind: input, shape index: {}]   ;;  %s431_s3 = inlined_call_operand.hbm [shape: f32[16,128], index: 3, kind: input, shape index: {}]   ;;  %s432_s4 = inlined_call_operand.hbm [shape: f32[16,128], index: 4, kind: input, shape index: {}]   ;;  %s433_s5 = inlined_call_operand.hbm [shape: f32[1,8,128], index: 5, kind: output, shape index: {}]  }
   0x1   :  { %11 = vsyncpa [#allocation6], 0 }
   0x2   :  { %12 = vsyncpa [#allocation9], 0 }
   0x3   :  { %13 = vsyncpa [#allocation4], 0  ;;  %s43_s20 = sshll.u32 %s429_s1, 4  ;;  %s372_s21 = smov [#allocation5]   ;;  %s44_s20 = int_to_ptr.hbm [resolvable:$true] %s43_s20 }
   0x4   :  { %s45_s22 = sshll.u32 %s372_s21, 4  ;;  %s81_s25 = sshll.u32 %s431_s3, 4  ;;  %s46_s22 = int_to_ptr.vmem [resolvable:$true] %s45_s22  ;;  %s82_s25 = int_to_ptr.hbm [resolvable:$true] %s81_s25 }
   0x5   :  { %s373_s26 = smov 128   ;;  %s374_s27 = smov 8  }
   0x6   :  { %51 = dma.hbm_to_vmem [thread:$0]  %s44_s20, 256, %s46_s22, [#allocation6], %s373_s26, %s373_s26, %s374_s27  }
   0x7   :  { %s375_s28 = smov [#allocation8]   ;;  %s24_s7 = sshll.u32 %s428_s0, 4  ;;  %s25_s7 = int_to_ptr.hbm [resolvable:$true] %s24_s7 }
   0x8   :  { %s83_s29 = sshll.u32 %s375_s28, 4  ;;  %s62_s9 = sshll.u32 %s430_s2, 4  ;;  %s84_s29 = int_to_ptr.vmem [resolvable:$true] %s83_s29  ;;  %s63_s9 = int_to_ptr.hbm [resolvable:$true] %s62_s9 }
   0x9   :  { %89 = dma.hbm_to_vmem [thread:$0]  %s82_s25, 256, %s84_s29, [#allocation9], %s373_s26, %s373_s26, %s374_s27  }
   0xa   :  { %s376_s10 = smov [#allocation2]   ;;  %s377_s3 = smov [#allocation7]  }
   0xb   :  { %s26_s11 = sshll.u32 %s376_s10, 4  ;;  %s64_s12 = sshll.u32 %s377_s3, 4  ;;  %s27_s11 = int_to_ptr.vmem [resolvable:$true] %s26_s11  ;;  %s65_s12 = int_to_ptr.vmem [resolvable:$true] %s64_s12 }
   0xc   :  { %32 = dma.hbm_to_vmem [thread:$0]  %s25_s7, 256, %s27_s11, [#allocation3], %s373_s26, %s373_s26, %s374_s27  }
   0xd   :  { %s100_s15 = sshll.u32 %s432_s4, 4  ;;  %s378_s0 = smov [#allocation10]   ;;  %s101_s15 = int_to_ptr.hbm [resolvable:$true] %s100_s15 }
   0xe   :  { %70 = dma.hbm_to_vmem [thread:$0]  %s63_s9, 256, %s65_s12, [#allocation6], %s373_s26, %s373_s26, %s374_s27  }
   0xf   :  { %s102_s16 = sshll.u32 %s378_s0, 4  ;;  %s103_s16 = int_to_ptr.vmem [resolvable:$true] %s102_s16 }
  0x10   :  { %108 = dma.hbm_to_vmem [thread:$0]  %s101_s15, 256, %s103_s16, [#allocation9], %s373_s26, %s373_s26, %s374_s27  }
  0x11   :  { %364 = dma.done.wait [#allocation3], 256  }
  0x12   :  { %365 = vsyncadd [#allocation3], 4294967040 }
  0x13   :  { %366 = dma.done.wait [#allocation6], 512  }
  0x14   :  { %367 = vsyncadd [#allocation6], 4294966784 }
  0x15   :  { %368 = dma.done.wait [#allocation9], 512  }
  0x16   :  { %369 = vsyncadd [#allocation9], 4294966784  ;;  %v154_v0 = vld [vmem:[#allocation2] sm:$0xff]  ;;  %v155_v1 = vld [vmem:[#allocation2 + $0x8] sm:$0xff]  ;;  %s379_s2 = smov [#allocation11]   ;;  %s189_s19 = sshll.u32 %s433_s5, 4  ;;  %s190_s19 = int_to_ptr.hbm [resolvable:$true] %s189_s19 }
  0x17   :  { %v156_v2 = vld [vmem:[#allocation8] sm:$0xff]  ;;  %v157_v3 = vld [vmem:[#allocation8 + $0x8] sm:$0xff]  ;;  %v162_v8 = vld [vmem:[#allocation10] sm:$0xff]  ;;  %s187_s4 = sshll.u32 %s379_s2, 4  ;;  %s188_s4 = int_to_ptr.vmem [resolvable:$true] %s187_s4 }
  0x18   :  { %v158_v4 = vsub.f32 %v154_v0, %v156_v2  ;;  %v160_v5 = vld [vmem:[#allocation5] sm:$0xff]  ;;  %v161_v6 = vld [vmem:[#allocation5 + $0x8] sm:$0xff]  ;;  %v159_v7 = vsub.f32 %v155_v1, %v157_v3  ;;  %v163_v9 = vld [vmem:[#allocation10 + $0x8] sm:$0xff] }
  0x19   :  { %v166_v10 = vld [vmem:[#allocation7] sm:$0xff]  ;;  %v164_v11 = vsub.f32 %v160_v5, %v162_v8  ;;  %v165_v12 = vsub.f32 %v161_v6, %v163_v9  ;;  %v167_v13 = vld [vmem:[#allocation7 + $0x8] sm:$0xff] }
  0x1a   :  { %v168_v14 = vmul.f32 %v158_v4, %v158_v4  ;;  %v169_v15 = vmul.f32 %v159_v7, %v159_v7  ;;  %v174_v18 = vmul.f32 %v166_v10, %v166_v10  ;;  %v175_v19 = vmul.f32 %v167_v13, %v167_v13 }
  0x1b   :  { %v170_v16 = vmul.f32 %v164_v11, %v164_v11  ;;  %v171_v17 = vmul.f32 %v165_v12, %v165_v12 }
  0x1d   :  { %v172_v20 = vadd.f32 %v170_v16, %v168_v14  ;;  %v173_v21 = vadd.f32 %v171_v17, %v169_v15 }
  0x1f   :  { %v176_v22 = vadd.f32 %v174_v18, %v172_v20  ;;  %v177_v23 = vadd.f32 %v175_v19, %v173_v21 }
  0x21   :  { %v179_v24 = vadd.f32 %v177_v23, %v176_v22 }
  0x23   :  { %181 = vst [vmem:[#allocation11] sm:$0xff] %v179_v24 }
  0x24   :  { %192 = dma.vmem_to_hbm [thread:$0]  %s188_s4, 128, %s190_s19, [#allocation4]  }
  0x25   :  { %370 = dma.done.wait [#allocation4], 128  }
  0x26   :  { %371 = vsyncadd [#allocation4], 4294967168 }
  0x27   :  { %197 = vsyncpa [#allocation3], 1 }
  0x28   :  { %198 = vsyncpa [#allocation6], 1 }
  0x29   :  { %199 = vsyncpa [#allocation9], 1 }
  0x2a   :  { %200 = vsyncpa [#allocation4], 1 }

</bundles_post_ra>
